<compile_context>
chip_gen: v7x
topology: tpu7x:2x2x1
jax: 0.10.0
libtpu: 0.0.40
codegen_flags: <defaults>
</compile_context>

<pallas_src>
import functools

import jax
import jax.numpy as jnp
from jax.experimental import pallas as pl
from jax.experimental.pallas import tpu as pltpu

H1 = 93
H2 = 90
INPUT_DIM = 32          # stand-in for X_train.shape[1] (synthetic, no checkpoint)
OUTPUT_DIM = 1

# Lane/MXU-aligned padded sizes for the hidden layers; narrow output slab.
H1_PAD = 128
H2_PAD = 128
OUT_STORE = 8           # 8-lane output store (col 0 is the real result)


def _round_up(x, m):
    return (x + m - 1) // m * m


def _choose_tile(B, tb):
    """Pick a sublane-aligned batch tile <= B (ragged last block is masked)."""
    if B <= 8:
        return B                       # single block == full (tiny) batch
    B8 = (B // 8) * 8                  # largest 8-aligned tile size <= B
    TB = min(tb, B8)
    # Prefer >= 2 grid steps once the batch is big enough to split, so
    # dimension_semantics=("parallel",) can shard across v7x's 2 TensorCores.
    if pl.cdiv(B, TB) < 2 and B >= 512:
        TB = min(B8, _round_up(pl.cdiv(B, 2), 8))
    return TB


def _mlp_kernel(x_ref, w1_ref, b1_ref, w2_ref, b2_ref, w3_ref, b3_ref, o_ref):
    # Layers 1-2: bf16 operands on the MXU, f32 accumulation; epilogue on VPU.
    x = x_ref[...].astype(jnp.bfloat16)
    h1 = jnp.dot(x, w1_ref[...], preferred_element_type=jnp.float32) + b1_ref[...]
    h1 = jnp.maximum(h1, 0.0).astype(jnp.bfloat16)
    h2 = jnp.dot(h1, w2_ref[...], preferred_element_type=jnp.float32) + b2_ref[...]
    h2 = jnp.maximum(h2, 0.0)
    # Layer 3 (out_features == 1): VPU multiply + XLU lane-reduce instead of a
    # (TB,128)@(128,128) MXU matmul with 127 dead output columns.  f32 exact.
    y = jnp.sum(h2 * w3_ref[...], axis=-1, keepdims=True)      # (TB, 1) f32
    # Narrow 8-lane output slab: 16x less HBM writeback than 128-lane padding.
    o_ref[...] = y + b3_ref[...]                                # -> (TB, 8)


def init_params(key):
    """Deterministic init mimicking nn.Linear's default U(-1/sqrt(fan_in), +).

    Returns logical-size f32 params, stored as (in, out) so forward is x @ W + b.
    """
    ks = jax.random.split(key, 6)

    def linear(kw, kb, fan_in, fan_out):
        bound = 1.0 / jnp.sqrt(jnp.float32(fan_in))
        w = jax.random.uniform(kw, (fan_in, fan_out), jnp.float32, -bound, bound)
        b = jax.random.uniform(kb, (1, fan_out), jnp.float32, -bound, bound)
        return w, b

    w1, b1 = linear(ks[0], ks[1], INPUT_DIM, H1)
    w2, b2 = linear(ks[2], ks[3], H1, H2)
    w3, b3 = linear(ks[4], ks[5], H2, OUTPUT_DIM)
    return (w1, b1, w2, b2, w3, b3)


def prepare_params(params):
    """Zero-pad to lane/MXU-aligned shapes; cast MXU operands to bf16.

    Zero padding is numerically exact (zero cols contribute 0, ReLU(0)=0).
    """
    w1, b1, w2, b2, w3, b3 = params

    def pad2(a, rows, cols):
        return jnp.pad(a, ((0, rows - a.shape[0]), (0, cols - a.shape[1])))

    w1p = pad2(w1, INPUT_DIM, H1_PAD).astype(jnp.bfloat16)
    b1p = pad2(b1, 1, H1_PAD)                                   # f32
    w2p = pad2(w2, H1_PAD, H2_PAD).astype(jnp.bfloat16)
    b2p = pad2(b2, 1, H2_PAD)                                   # f32
    # Final layer runs on the VPU/XLU in f32: keep w3 as a (1, H2_PAD) row.
    w3p = pad2(w3.T, 1, H2_PAD)                                 # f32 (1, 128)
    b3p = jnp.broadcast_to(b3.reshape(1, 1), (1, OUT_STORE)).astype(jnp.float32)
    return (w1p, b1p, w2p, b2p, w3p, b3p)


@functools.partial(jax.jit, static_argnames=("tb",))
def regression_forward(x, prepared, *, tb=4096):
    """Fused MLP forward. x: (B, INPUT_DIM) f32 (or bf16) -> (B, 1) float32.

    tb: max batch tile. Large tiles amortize the per-grid-step pipeline
    overhead; VMEM use stays a few MiB even at tb=4096 on all generations.
    """
    w1p, b1p, w2p, b2p, w3p, b3p = prepared
    B = x.shape[0]
    TB = _choose_tile(B, tb)
    grid = (pl.cdiv(B, TB),)           # ragged final block is masked by Pallas

    def resident(shape):               # constant block index -> DMA'd once,
        return pl.BlockSpec(shape, lambda i: (0, 0))   # stays VMEM-resident

    out = pl.pallas_call(
        _mlp_kernel,
        out_shape=jax.ShapeDtypeStruct((B, OUT_STORE), jnp.float32),
        grid=grid,
        in_specs=[
            pl.BlockSpec((TB, INPUT_DIM), lambda i: (i, 0)),   # x: batch-tiled
            resident((INPUT_DIM, H1_PAD)),                     # w1 (bf16)
            resident((1, H1_PAD)),                             # b1 (f32)
            resident((H1_PAD, H2_PAD)),                        # w2 (bf16)
            resident((1, H2_PAD)),                             # b2 (f32)
            resident((1, H2_PAD)),                             # w3 row (f32)
            resident((1, OUT_STORE)),                          # b3 (f32)
        ],
        out_specs=pl.BlockSpec((TB, OUT_STORE), lambda i: (i, 0)),
        compiler_params=pltpu.CompilerParams(
            dimension_semantics=("parallel",)),
    )(x, w1p, b1p, w2p, b2p, w3p, b3p)

    return out[:, :OUTPUT_DIM]


def _reference_forward(x, params):
    """Pure-JAX f32 reference (exact PyTorch forward semantics)."""
    w1, b1, w2, b2, w3, b3 = params
    h1 = jnp.maximum(x @ w1 + b1, 0.0)
    h2 = jnp.maximum(h1 @ w2 + b2, 0.0)
    return h2 @ w3 + b3


if __name__ == "__main__":
    key = jax.random.PRNGKey(0)
    k_params, k_x, k_x2 = jax.random.split(key, 3)

    params = init_params(k_params)
    prepared = prepare_params(params)

    # Small single-tile case (batch = 8).
    x = jax.random.normal(k_x, (8, INPUT_DIM), jnp.float32)
    out = jax.block_until_ready(regression_forward(x, prepared))
    ref = _reference_forward(x, params)
    assert out.shape == (8, OUTPUT_DIM)
    # bf16 matmul operands (f32 accumulate) -> loosened tolerance vs f32 ref.
    assert jnp.allclose(out, ref, atol=5e-2, rtol=5e-2), "mismatch vs reference (B=8)"

    # Multi-tile case exercising the grid + ragged final block (B=300 -> TB=296,
    # grid=(2,), last block masked).
    x2 = jax.random.normal(k_x2, (300, INPUT_DIM), jnp.float32)
    out2 = jax.block_until_ready(regression_forward(x2, prepared))
    ref2 = _reference_forward(x2, params)
    assert out2.shape == (300, OUTPUT_DIM)
    assert jnp.allclose(out2, ref2, atol=5e-2, rtol=5e-2), "mismatch vs reference (B=300)"

    print("KERNEL_OK")
</pallas_src>

<mosaic_0001>
module attributes {stable_mosaic.version = 11 : i64} {
  func.func @_mlp_kernel(%arg0: i32, %arg1: memref<8x32xf32, #tpu.memory_space<vmem>>, %arg2: memref<32x128xbf16, #tpu.memory_space<vmem>>, %arg3: memref<1x128xf32, #tpu.memory_space<vmem>>, %arg4: memref<128x128xbf16, #tpu.memory_space<vmem>>, %arg5: memref<1x128xf32, #tpu.memory_space<vmem>>, %arg6: memref<1x128xf32, #tpu.memory_space<vmem>>, %arg7: memref<1x8xf32, #tpu.memory_space<vmem>>, %arg8: memref<8x8xf32, #tpu.memory_space<vmem>>) attributes {dimension_semantics = [#tpu.dimension_semantics<parallel>], iteration_bounds = array<i64: 1>, scalar_prefetch = 0 : i64, scratch_operands = 0 : i64, tpu.core_type = #tpu.core_type<tc>, window_params = [{transform_indices = @transform_0, window_bounds = array<i64: 8, 32>}, {pipeline_mode = #tpu.pipeline_mode<synchronous>, transform_indices = @transform_1, window_bounds = array<i64: 32, 128>}, {pipeline_mode = #tpu.pipeline_mode<synchronous>, transform_indices = @transform_2, window_bounds = array<i64: 1, 128>}, {pipeline_mode = #tpu.pipeline_mode<synchronous>, transform_indices = @transform_3, window_bounds = array<i64: 128, 128>}, {pipeline_mode = #tpu.pipeline_mode<synchronous>, transform_indices = @transform_4, window_bounds = array<i64: 1, 128>}, {pipeline_mode = #tpu.pipeline_mode<synchronous>, transform_indices = @transform_5, window_bounds = array<i64: 1, 128>}, {pipeline_mode = #tpu.pipeline_mode<synchronous>, transform_indices = @transform_6, window_bounds = array<i64: 1, 8>}, {transform_indices = @transform_7, window_bounds = array<i64: 8, 8>}]} {
    %c0 = arith.constant 0 : index
    %c0_0 = arith.constant 0 : index
    %0 = vector.load %arg1[%c0, %c0_0] : memref<8x32xf32, #tpu.memory_space<vmem>>, vector<8x32xf32>
    %1 = arith.truncf %0 : vector<8x32xf32> to vector<8x32xbf16>
    %c0_1 = arith.constant 0 : index
    %c0_2 = arith.constant 0 : index
    %2 = vector.load %arg2[%c0_1, %c0_2] : memref<32x128xbf16, #tpu.memory_space<vmem>>, vector<32x128xbf16>
    %cst = arith.constant dense<0.000000e+00> : vector<8x128xf32>
    %3 = tpu.matmul %1, %2, %cst {dimension_numbers = #tpu.dot_dimension_numbers<[1], [0], [0], [1], [0, 0, 1, 1], [], []>} : vector<8x32xbf16>, vector<32x128xbf16>, vector<8x128xf32> -> vector<8x128xf32>
    %c0_3 = arith.constant 0 : index
    %c0_4 = arith.constant 0 : index
    %4 = vector.load %arg3[%c0_3, %c0_4] : memref<1x128xf32, #tpu.memory_space<vmem>>, vector<1x128xf32>
    %5 = vector.broadcast %4 : vector<1x128xf32> to vector<8x128xf32>
    %6 = arith.addf %3, %5 : vector<8x128xf32>
    %cst_5 = arith.constant 0.000000e+00 : f32
    %7 = vector.broadcast %cst_5 : f32 to vector<8x128xf32>
    %8 = arith.maximumf %6, %7 : vector<8x128xf32>
    %9 = arith.truncf %8 : vector<8x128xf32> to vector<8x128xbf16>
    %c0_6 = arith.constant 0 : index
    %c0_7 = arith.constant 0 : index
    %10 = vector.load %arg4[%c0_6, %c0_7] : memref<128x128xbf16, #tpu.memory_space<vmem>>, vector<128x128xbf16>
    %cst_8 = arith.constant dense<0.000000e+00> : vector<8x128xf32>
    %11 = tpu.matmul %9, %10, %cst_8 {dimension_numbers = #tpu.dot_dimension_numbers<[1], [0], [0], [1], [0, 0, 1, 1], [], []>} : vector<8x128xbf16>, vector<128x128xbf16>, vector<8x128xf32> -> vector<8x128xf32>
    %c0_9 = arith.constant 0 : index
    %c0_10 = arith.constant 0 : index
    %12 = vector.load %arg5[%c0_9, %c0_10] : memref<1x128xf32, #tpu.memory_space<vmem>>, vector<1x128xf32>
    %13 = vector.broadcast %12 : vector<1x128xf32> to vector<8x128xf32>
    %14 = arith.addf %11, %13 : vector<8x128xf32>
    %cst_11 = arith.constant 0.000000e+00 : f32
    %15 = vector.broadcast %cst_11 : f32 to vector<8x128xf32>
    %16 = arith.maximumf %14, %15 : vector<8x128xf32>
    %c0_12 = arith.constant 0 : index
    %c0_13 = arith.constant 0 : index
    %17 = vector.load %arg6[%c0_12, %c0_13] : memref<1x128xf32, #tpu.memory_space<vmem>>, vector<1x128xf32>
    %18 = vector.broadcast %17 : vector<1x128xf32> to vector<8x128xf32>
    %19 = arith.mulf %16, %18 : vector<8x128xf32>
    %cst_14 = arith.constant dense<0.000000e+00> : vector<8xf32>
    %20 = vector.multi_reduction <add>, %19, %cst_14 [1] : vector<8x128xf32> to vector<8xf32>
    %21 = vector.shape_cast %20 : vector<8xf32> to vector<8x1xf32>
    %c0_15 = arith.constant 0 : index
    %c0_16 = arith.constant 0 : index
    %22 = vector.load %arg7[%c0_15, %c0_16] : memref<1x8xf32, #tpu.memory_space<vmem>>, vector<1x8xf32>
    %23 = vector.broadcast %21 : vector<8x1xf32> to vector<8x8xf32>
    %24 = vector.broadcast %22 : vector<1x8xf32> to vector<8x8xf32>
    %25 = arith.addf %23, %24 : vector<8x8xf32>
    %c0_17 = arith.constant 0 : index
    %c0_18 = arith.constant 0 : index
    %26 = vector.load %arg8[%c0_17, %c0_18] : memref<8x8xf32, #tpu.memory_space<vmem>>, vector<8x8xf32>
    tpu.vector_store %arg8[%c0_17, %c0_18], %25 {strides = array<i32>} : memref<8x8xf32, #tpu.memory_space<vmem>>, vector<8x8xf32>,
    return
  }
  func.func @transform_0(%arg0: i32) -> (i32, i32) {
    %c0_i32 = arith.constant 0 : i32
    %c0_i32_0 = arith.constant 0 : i32
    return %arg0, %c0_i32 : i32, i32
  }
  func.func @transform_1(%arg0: i32) -> (i32, i32) {
    %c0_i32 = arith.constant 0 : i32
    %c0_i32_0 = arith.constant 0 : i32
    %c0_i32_1 = arith.constant 0 : i32
    return %c0_i32, %c0_i32_0 : i32, i32
  }
  func.func @transform_2(%arg0: i32) -> (i32, i32) {
    %c0_i32 = arith.constant 0 : i32
    %c0_i32_0 = arith.constant 0 : i32
    %c0_i32_1 = arith.constant 0 : i32
    return %c0_i32, %c0_i32_0 : i32, i32
  }
  func.func @transform_3(%arg0: i32) -> (i32, i32) {
    %c0_i32 = arith.constant 0 : i32
    %c0_i32_0 = arith.constant 0 : i32
    %c0_i32_1 = arith.constant 0 : i32
    return %c0_i32, %c0_i32_0 : i32, i32
  }
  func.func @transform_4(%arg0: i32) -> (i32, i32) {
    %c0_i32 = arith.constant 0 : i32
    %c0_i32_0 = arith.constant 0 : i32
    %c0_i32_1 = arith.constant 0 : i32
    return %c0_i32, %c0_i32_0 : i32, i32
  }
  func.func @transform_5(%arg0: i32) -> (i32, i32) {
    %c0_i32 = arith.constant 0 : i32
    %c0_i32_0 = arith.constant 0 : i32
    %c0_i32_1 = arith.constant 0 : i32
    return %c0_i32, %c0_i32_0 : i32, i32
  }
  func.func @transform_6(%arg0: i32) -> (i32, i32) {
    %c0_i32 = arith.constant 0 : i32
    %c0_i32_0 = arith.constant 0 : i32
    %c0_i32_1 = arith.constant 0 : i32
    return %c0_i32, %c0_i32_0 : i32, i32
  }
  func.func @transform_7(%arg0: i32) -> (i32, i32) {
    %c0_i32 = arith.constant 0 : i32
    %c0_i32_0 = arith.constant 0 : i32
    return %arg0, %c0_i32 : i32, i32
  }
}

</mosaic_0001>

<bundles_post_ra>
// kernel: regression_forward.1
= control target key start
LH: loop header
LB: loop body
LE: loop exit
PB: predicated region body
PF: predicated region fallthrough
CT: control target
= control target key end

     0   :  { %12 = vsyncpa [#allocation3], 0  ;;  %s521_s0 = inlined_call_operand.hbm [shape: f32[8,32], index: 0, kind: input, shape index: {}]   ;;  %s522_s1 = inlined_call_operand.hbm [shape: bf16[32,128], index: 1, kind: input, shape index: {}]   ;;  %s523_s2 = inlined_call_operand.vmem [shape: f32[1,128], index: 2, kind: input, shape index: {}]   ;;  %s524_s3 = inlined_call_operand.hbm [shape: bf16[128,128], index: 3, kind: input, shape index: {}]   ;;  %s525_s4 = inlined_call_operand.vmem [shape: f32[1,128], index: 4, kind: input, shape index: {}]   ;;  %s526_s5 = inlined_call_operand.vmem [shape: f32[1,128], index: 5, kind: input, shape index: {}]   ;;  %s527_s6 = inlined_call_operand.vmem [shape: f32[1,8], index: 6, kind: input, shape index: {}]   ;;  %s528_s7 = inlined_call_operand.vmem [shape: f32[8,8], index: 7, kind: output, shape index: {}]  }
   0x1   :  { %13 = vsyncpa [#allocation5], 0  ;;  %s417_s24 = smov [#allocation4]   ;;  %s347_s28 = scalar_lea.hbm %s522_s1, 256 }
   0x2   :  { %s29_s25 = sshll.u32 %s417_s24, 4  ;;  %p348_p0 = scmp.ne.s32.totalorder %s522_s1, %s347_s28  ;;  %s30_s25 = int_to_ptr.vmem [resolvable:$true] %s29_s25 }
   0x3   :  { %p351_p1 = scmp.lt.u32.totalorder %s347_s28, %s522_s1 }
   0x5   :  { %p353_p2 = pnand %p351_p1, %p348_p0 }
   0x7   :  { %356 = shalt.err (!%p353_p2)
}
   0x8   :  { %s357_s10 = scalar_lea.vmem %s30_s25, 256  ;;  %p362_p4 = scmp.lt.s32.totalorder %s30_s25, %s30_s25 }
   0x9   :  { %p358_p3 = scmp.ne.s32.totalorder %s30_s25, %s357_s10  ;;  %p363_p5 = scmp.lt.s32.totalorder %s357_s10, %s357_s10 }
   0xb   :  { %p364_p6 = por %p363_p5, %p362_p4 }
   0xd   :  { %p365_p7 = pnand %p364_p6, %p358_p3 }
   0xf   :  { %368 = shalt.err (!%p365_p7)
}
  0x10   :  { %s418_s11 = smov 64   ;;  %s419_s12 = smov 4  }
  0x11   :  { %35 = dma.hbm_to_vmem [thread:$0]  %s522_s1, 256, %s30_s25, [#allocation5], %s418_s11, %s418_s11, %s419_s12  }
  0x12   :  { %s420_s15 = smov [#allocation2]   ;;  %s421_s17 = smov [#allocation6]  }
  0x13   :  { %s20_s16 = sshll.u32 %s420_s15, 4  ;;  %s43_s18 = sshll.u32 %s421_s17, 4  ;;  %s21_s16 = int_to_ptr.vmem [resolvable:$true] %s20_s16  ;;  %s44_s18 = int_to_ptr.vmem [resolvable:$true] %s43_s18 }
  0x14   :  { %s369_s21 = scalar_lea.hbm %s521_s0, 128 }
  0x15   :  { %p370_p8 = scmp.ne.s32.totalorder %s521_s0, %s369_s21  ;;  %p373_p9 = scmp.lt.u32.totalorder %s369_s21, %s521_s0 }
  0x17   :  { %p375_p10 = pnand %p373_p9, %p370_p8 }
  0x19   :  { %378 = shalt.err (!%p375_p10)
}
  0x1a   :  { %s379_s1 = scalar_lea.vmem %s21_s16, 128  ;;  %p384_p12 = scmp.lt.s32.totalorder %s21_s16, %s21_s16 }
  0x1b   :  { %p380_p11 = scmp.ne.s32.totalorder %s21_s16, %s379_s1  ;;  %p385_p13 = scmp.lt.s32.totalorder %s379_s1, %s379_s1 }
  0x1d   :  { %p386_p0 = por %p385_p13, %p384_p12 }
  0x1f   :  { %p387_p1 = pnand %p386_p0, %p380_p11 }
  0x21   :  { %390 = shalt.err (!%p387_p1)
}
  0x22   :  { %23 = dma.hbm_to_vmem [thread:$0]  %s521_s0, 128, %s21_s16, [#allocation3]  }
  0x23   :  { %s391_s30 = scalar_lea.hbm %s524_s3, 1024 }
  0x24   :  { %p392_p2 = scmp.ne.s32.totalorder %s524_s3, %s391_s30  ;;  %p395_p3 = scmp.lt.u32.totalorder %s391_s30, %s524_s3 }
  0x26   :  { %p397_p4 = pnand %p395_p3, %p392_p2 }
  0x28   :  { %400 = shalt.err (!%p397_p4)
}
  0x29   :  { %s401_s14 = scalar_lea.vmem %s44_s18, 1024  ;;  %p406_p6 = scmp.lt.s32.totalorder %s44_s18, %s44_s18 }
  0x2a   :  { %p402_p5 = scmp.ne.s32.totalorder %s44_s18, %s401_s14  ;;  %p407_p7 = scmp.lt.s32.totalorder %s401_s14, %s401_s14 }
  0x2c   :  { %p408_p8 = por %p407_p7, %p406_p6 }
  0x2e   :  { %p409_p9 = pnand %p408_p8, %p402_p5 }
  0x30   :  { %412 = shalt.err (!%p409_p9)
}
  0x31   :  { %49 = dma.hbm_to_vmem [thread:$0]  %s524_s3, 1024, %s44_s18, [#allocation5], %s418_s11, %s418_s11, %s419_s12  }
  0x32   :  { %413 = dma.done.wait [#allocation3], 128  }
  0x33   :  { %414 = vsyncadd [#allocation3], 4294967168 }
  0x34   :  { %415 = dma.done.wait [#allocation5], 1280  }
  0x35   :  { %416 = vsyncadd [#allocation5], 4294966016  ;;  %v422_v0 = vmov 0.0   ;;  %vm423_vm0 = vmmov 0   ;;  %v337_v1 = vld [vmem:[#allocation4] sm:$0xff]   ;;  %v338_v2 = vld [vmem:[#allocation4 + $0x8] sm:$0xff]  }
  0x36   :  { %302 = vmatprep.subr.bf16.mxu0 %v422_v0  ;;  %306 = vmatprep.mubr.msk.bf16.mxu0 %vm423_vm0, %v422_v0  ;;  %v66_v3 = vld [vmem:[#allocation2] sm:$0xff]  ;;  %v339_v4 = vld [vmem:[#allocation6] sm:$0xff]   ;;  %vm91_vm1 = vcmask 261120   ;;  %v341_v7 = vld [vmem:[#allocation6 + $0x10] sm:$0xff]   ;;  %vm267_vm2 = vcmask 64512  }
  0x37   :  { %310 = vmatprep.subr.bf16.mxu1 %v422_v0  ;;  %326 = vmatprep.mubr.msk.bf16.mxu1 %vm423_vm0, %v422_v0  ;;  %v67_v5 = vpack.c.bf16 %v66_v3, %v66_v3  ;;  %v340_v6 = vld [vmem:[#allocation6 + $0x8] sm:$0xff]   ;;  %v342_v8 = vld [vmem:[#allocation6 + $0x18] sm:$0xff]   ;;  %v343_v9 = vld [vmem:[#allocation6 + $0x20] sm:$0xff]  }
  0x38   :  { %303 = vmatpush3.bf16.msra.mxu0 %v337_v1  ;;  %311 = vmatpush3.bf16.msra.mxu1 %v339_v4  ;;  %v344_v10 = vld [vmem:[#allocation6 + $0x28] sm:$0xff]   ;;  %v345_v11 = vld [vmem:[#allocation6 + $0x30] sm:$0xff]   ;;  %v346_v12 = vld [vmem:[#allocation6 + $0x38] sm:$0xff]  }
  0x39   :  { %304 = vmatprep.subr.bf16.mxu0 %v422_v0  ;;  %312 = vmatprep.subr.bf16.mxu1 %v422_v0  ;;  %v275_v13 = vld [vmem:[%s523_s2] ss:$0 sm:$0xff] }
  0x3a   :  { %v279_v21 = vld [vmem:[%s525_s4] ss:$0 sm:$0xff] }
  0x3b   :  { %v288_v26 = vld [vmem:[%s526_s5] ss:$0 sm:$0xff] }
  0x3c   :  { %305 = vmatpush3.bf16.msra.mxu0 %v338_v2  ;;  %313 = vmatpush3.bf16.msra.mxu1 %v340_v6  ;;  %v289_v30 = vld [vmem:[%s527_s6] ss:$0 sm:$0xff] }
  0x3d   :  { %314 = vmatprep.subr.bf16.mxu1 %v422_v0 }
  0x3f   :  { %307 = vmatmul.mubr.msk.bf16.vlgmr.msra.gmra.mrb[0].mxu0 %vm91_vm1, %v67_v5 }
  0x40   :  { %315 = vmatpush3.bf16.msra.mxu1 %v341_v7 }
  0x41   :  { %316 = vmatprep.subr.bf16.mxu1 %v422_v0 }
  0x44   :  { %317 = vmatpush3.bf16.msra.mxu1 %v342_v8 }
  0x45   :  { %318 = vmatprep.subr.bf16.mxu1 %v422_v0 }
  0x48   :  { %319 = vmatpush3.bf16.msra.mxu1 %v343_v9 }
  0x49   :  { %320 = vmatprep.subr.bf16.mxu1 %v422_v0 }
  0x4c   :  { %321 = vmatpush3.bf16.msra.mxu1 %v344_v10 }
  0x4d   :  { %322 = vmatprep.subr.bf16.mxu1 %v422_v0 }
  0x50   :  { %323 = vmatpush3.bf16.msra.mxu1 %v345_v11 }
  0x51   :  { %324 = vmatprep.subr.bf16.mxu1 %v422_v0 }
  0x54   :  { %325 = vmatpush3.bf16.msra.mxu1 %v346_v12 }
 0x112   :  { %v129_v14 = vpop.f32.mrb[0].mxu0 }
 0x113   :  { %v130_v15 = vadd.f32 %v275_v13, %v129_v14  ;;  %v308_v16 = vpop.f32.mrb[1].mxu0 }
 0x114   :  { %v132_v17 = vpop.f32.mrb[2].mxu0 }
 0x115   :  { %v135_v18 = vmax.f32 %v130_v15, 0.0  ;;  %v309_v19 = vpop.f32.mrb[3].mxu0 }
 0x117   :  { %v136_v20 = vpack.c.bf16 %v135_v18, %v135_v18 }
 0x119   :  { %327 = vmatmul.mubr.bf16.vlgmr.msra.gmra.mrb[0].mxu1 %v136_v20 }
 0x1ec   :  { %v242_v22 = vpop.f32.mrb[0].mxu1 }
 0x1ed   :  { %v243_v23 = vadd.f32 %v279_v21, %v242_v22  ;;  %v328_v24 = vpop.f32.mrb[1].mxu1 }
 0x1ee   :  { %v245_v25 = vpop.f32.mrb[2].mxu1 }
 0x1ef   :  { %v248_v27 = vmax.f32 %v243_v23, 0.0  ;;  %v329_v28 = vpop.f32.mrb[3].mxu1 }
 0x1f1   :  { %v256_v29 = vmul.f32 %v288_v26, %v248_v27 }
 0x1f3   :  { %257 = vadd.xlane.f32.xlu0 %v256_v29 }
 0x280   :  { %v258_v31 = vpop.xlane.xlu0 %257 }
 0x281   :  { %v266_v32 = vadd.f32 %v289_v30, %v258_v31 }
 0x283   :  { %268 = vst.msk [vmem:[%s528_s7] sm:$0xff] %vm267_vm2, %v266_v32 }
 0x284   :  { %273 = vsyncpa [#allocation3], 1 }
 0x285   :  { %274 = vsyncpa [#allocation5], 1 }

</bundles_post_ra>
